<compile_context>
chip_gen: v5e
topology: v5e:2x2
jax: 0.10.0
libtpu: 0.0.40
codegen_flags: <defaults>
</compile_context>

<pallas_src>
import jax
import jax.numpy as jnp
from jax import lax
from jax.experimental import pallas as pl
from jax.experimental.pallas import tpu as pltpu


def _round_up(v, m):
    return ((v + m - 1) // m) * m


def _biaffine_kernel(x_ref, w_ref, y_ref, o_ref, xw_ref):
    # x_ref : (1, TM, Kx)   bias-folded, zero-padded x tile (batch b, x-tile i)
    # w_ref : (1, Kx, Ky)   zero-padded weight slice for output channel o
    # y_ref : (1, TN, Ky)   bias-folded, zero-padded y tile (batch b, y-tile j)
    # o_ref : (1, 1, TM, TN) score tile
    # xw_ref: (TM, Ky)      scratch: x_tile @ W[o], reused over every y tile
    @pl.when(pl.program_id(3) == 0)
    def _():
        xw = jnp.dot(x_ref[0], w_ref[0], preferred_element_type=jnp.float32)
        xw_ref[...] = xw.astype(xw_ref.dtype)

    # Second matmul: contract the (padded) feature axis of both operands
    # directly -- no explicit transpose of the y tile.
    s = lax.dot_general(
        xw_ref[...], y_ref[0],
        dimension_numbers=(((1,), (1,)), ((), ())),
        preferred_element_type=jnp.float32)                        # (TM, TN)
    o_ref[0, 0] = s.astype(o_ref.dtype)


def _augment(v, add_ones, k_pad, dtype):
    """Cast to `dtype`, append a ones column if `add_ones`, zero-pad to k_pad."""
    B, S, n = v.shape
    parts = [v.astype(dtype)]
    if add_ones:
        parts.append(jnp.ones((B, S, 1), dtype))
    d = n + int(add_ones)
    if k_pad > d:
        parts.append(jnp.zeros((B, S, k_pad - d), dtype))
    return parts[0] if len(parts) == 1 else jnp.concatenate(parts, axis=-1)


def biaffine_forward(x, y, weight, *, bias_x=True, bias_y=True,
                     mxu_dtype=jnp.bfloat16, out_dtype=jnp.float32,
                     tm=None, tn=None):
    """x, y: [B, S, n_in]; weight: [n_out, n_in+bias_x, n_in+bias_y]."""
    B, S, n_in = x.shape
    n_out, Dx, Dy = weight.shape
    assert Dx == n_in + int(bias_x) and Dy == n_in + int(bias_y)

    mm_dtype = jnp.dtype(mxu_dtype)
    Kx = _round_up(Dx, 128)          # lane-aligned contraction dims
    Ky = _round_up(Dy, 128)

    # Bias fold + zero-pad fused with the dtype cast (one XLA pass over x / y).
    xp = _augment(x, bias_x, Kx, mm_dtype)                   # [B, S, Kx]
    yp = _augment(y, bias_y, Ky, mm_dtype)                   # [B, S, Ky]
    wp = jnp.pad(weight.astype(mm_dtype),
                 ((0, 0), (0, Kx - Dx), (0, Ky - Dy)))        # [n_out, Kx, Ky]

    # Tile sizes over seq_x / seq_y (multiples of 8 / 128, or the full extent).
    if tm is None:
        tm = S if S <= 512 else 512
        # v7x megacore: with B == n_out == 1 and a single x-tile the grid would
        # collapse to one parallel block; split it so both TensorCores run.
        if B * n_out == 1 and S <= tm and S >= 16:
            tm = _round_up(pl.cdiv(S, 2), 8)
    if tn is None:
        tn = S if S <= 512 else 512

    n_xt = pl.cdiv(S, tm)
    n_yt = pl.cdiv(S, tn)
    # Grid order (b, i, o, j): x tile constant across (o, j) -> DMA'd once per
    # (b, i); j innermost so the hoisted xw scratch is reused across y tiles.
    grid = (B, n_xt, n_out, n_yt)

    mm_isz = jnp.dtype(mm_dtype).itemsize
    out_isz = jnp.dtype(out_dtype).itemsize

    # Pipeline VMEM estimate (double-buffered inputs/output + xw scratch);
    # stays a few MiB for typical biaffine sizes, well under v7x's 64 MiB.
    vmem_est = (2 * tm * Kx * mm_isz + 2 * Kx * Ky * mm_isz
                + 2 * tn * Ky * mm_isz + 2 * tm * tn * out_isz
                + tm * Ky * mm_isz)
    vmem_limit = int(min(64 << 20, max(32 << 20, vmem_est + (8 << 20))))

    cost = pl.CostEstimate(
        flops=(2 * B * n_out * S * Kx * Ky          # hoisted x @ W (per (b,i,o))
               + 2 * B * n_out * S * S * Ky),       # (xW) @ y^T
        transcendentals=0,
        bytes_accessed=(B * S * Kx * mm_isz                          # x once/(b,i)
                        + B * n_xt * n_out * Kx * Ky * mm_isz        # W
                        + B * n_out * n_xt * S * Ky * mm_isz         # y re-reads
                        + B * n_out * S * S * out_isz),              # score writes
    )

    # TODO(synk): for large n_out with tiny W, a grid-constant whole-W BlockSpec
    # ((n_out, Kx, Ky), index (0,0,0)) would avoid the per-(i,o) W re-fetch.
    out = pl.pallas_call(
        _biaffine_kernel,
        out_shape=jax.ShapeDtypeStruct((B, n_out, S, S), out_dtype),
        grid_spec=pltpu.PrefetchScalarGridSpec(
            num_scalar_prefetch=0,
            grid=grid,
            in_specs=[
                # x tile: constant across (o, j) -> not re-DMA'd over those axes.
                pl.BlockSpec((1, tm, Kx), lambda b, i, o, j: (b, i, 0)),
                # W[o]: constant across j (and across (b, i) when n_out == 1).
                pl.BlockSpec((1, Kx, Ky), lambda b, i, o, j: (o, 0, 0)),
                # y tile: changes with the innermost axis.
                pl.BlockSpec((1, tn, Ky), lambda b, i, o, j: (b, j, 0)),
            ],
            out_specs=pl.BlockSpec((1, 1, tm, tn),
                                   lambda b, i, o, j: (b, o, i, j)),
            scratch_shapes=[
                pltpu.VMEM((tm, Ky), mm_dtype),   # xw = x_tile @ W[o]
            ],
        ),
        compiler_params=pltpu.CompilerParams(
            # seq_y carries the xw-scratch reuse -> "arbitrary"; the rest shard
            # across TensorCores on megacore / dual-TC parts.
            dimension_semantics=("parallel", "parallel", "parallel", "arbitrary"),
            vmem_limit_bytes=vmem_limit,
        ),
        cost_estimate=cost,
    )(xp, wp, yp)

    if n_out == 1:
        out = jnp.squeeze(out, axis=1)  # matches torch `s.squeeze(1)` for n_out == 1
    return out


def biaffine_reference(x, y, weight, *, bias_x=True, bias_y=True):
    if bias_x:
        x = jnp.concatenate([x, jnp.ones_like(x[..., :1])], axis=-1)
    if bias_y:
        y = jnp.concatenate([y, jnp.ones_like(y[..., :1])], axis=-1)
    s = jnp.einsum('bxi,oij,byj->boxy', x, weight, y,
                   precision=lax.Precision.HIGHEST)
    if weight.shape[0] == 1:
        s = jnp.squeeze(s, axis=1)
    return s


if __name__ == "__main__":
    key = jax.random.PRNGKey(0)
    kx, ky, kw = jax.random.split(key, 3)

    # --- Small deterministic config: B=2, S=8, n_in=32, n_out=2, both biases.
    B, S, n_in, n_out = 2, 8, 32, 2
    x = jax.random.normal(kx, (B, S, n_in), jnp.float32)
    y = jax.random.normal(ky, (B, S, n_in), jnp.float32)
    # NOTE: PyTorch reset_parameters() zero-inits the weight; a deterministic
    # random init makes the numerical check non-trivial (same forward math).
    w = jax.random.normal(kw, (n_out, n_in + 1, n_in + 1), jnp.float32) * 0.1

    ref = biaffine_reference(x, y, w)

    # f32-MXU path: tight algorithmic check.
    out_f32 = jax.block_until_ready(
        biaffine_forward(x, y, w, mxu_dtype=jnp.float32))
    assert out_f32.shape == ref.shape, (out_f32.shape, ref.shape)
    assert jnp.allclose(out_f32, ref, atol=1e-4, rtol=1e-4), float(
        jnp.max(jnp.abs(out_f32 - ref)))

    # Default (bf16-MXU, f32-accumulate) fast path: relative-error check.
    out_bf = jax.block_until_ready(biaffine_forward(x, y, w))
    rel = float(jnp.max(jnp.abs(out_bf - ref)) / (jnp.max(jnp.abs(ref)) + 1e-6))
    assert rel < 2e-2, rel

    # --- n_out == 1 squeeze path.
    w1 = jax.random.normal(kw, (1, n_in + 1, n_in + 1), jnp.float32) * 0.1
    out1 = jax.block_until_ready(
        biaffine_forward(x, y, w1, mxu_dtype=jnp.float32))
    ref1 = biaffine_reference(x, y, w1)
    assert out1.shape == (B, S, S)
    assert jnp.allclose(out1, ref1, atol=1e-4, rtol=1e-4)

    # --- Asymmetric / missing bias flags (wrapper-side bias fold paths).
    for bx, by in ((False, True), (True, False), (False, False)):
        wa = jax.random.normal(
            kw, (n_out, n_in + int(bx), n_in + int(by)), jnp.float32) * 0.1
        outa = jax.block_until_ready(
            biaffine_forward(x, y, wa, bias_x=bx, bias_y=by,
                             mxu_dtype=jnp.float32))
        refa = biaffine_reference(x, y, wa, bias_x=bx, bias_y=by)
        assert jnp.allclose(outa, refa, atol=1e-4, rtol=1e-4), (bx, by)

    # --- Tiled path: S=384, explicit (256, 256) tiles -> partial edge tiles.
    B2, S2, n_in2 = 1, 384, 64
    x2 = jax.random.normal(kx, (B2, S2, n_in2), jnp.float32)
    y2 = jax.random.normal(ky, (B2, S2, n_in2), jnp.float32)
    w2 = jax.random.normal(kw, (1, n_in2 + 1, n_in2 + 1), jnp.float32) * 0.05

    ref2 = biaffine_reference(x2, y2, w2)
    out2 = jax.block_until_ready(
        biaffine_forward(x2, y2, w2, mxu_dtype=jnp.float32, tm=256, tn=256))
    assert out2.shape == (B2, S2, S2)
    assert jnp.allclose(out2, ref2, atol=1e-3, rtol=1e-3), float(
        jnp.max(jnp.abs(out2 - ref2)))

    # --- Default fast path on the same shape: bf16 MXU + bf16 output, and
    #     the B*n_out==1 two-block x-tile split (dual-TC coverage on v7x).
    out2_bf = jax.block_until_ready(
        biaffine_forward(x2, y2, w2, out_dtype=jnp.bfloat16))
    rel2 = float(jnp.max(jnp.abs(out2_bf.astype(jnp.float32) - ref2))
                 / (jnp.max(jnp.abs(ref2)) + 1e-6))
    assert rel2 < 3e-2, rel2

    print("KERNEL_OK")
</pallas_src>

<mosaic_0001>
module attributes {stable_mosaic.version = 11 : i64} {
  func.func @_biaffine_kernel(%arg0: i32, %arg1: i32, %arg2: i32, %arg3: i32, %arg4: memref<1x8x128xf32, #tpu.memory_space<vmem>>, %arg5: memref<1x128x128xf32, #tpu.memory_space<vmem>>, %arg6: memref<1x8x128xf32, #tpu.memory_space<vmem>>, %arg7: memref<1x1x8x8xf32, #tpu.memory_space<vmem>>, %arg8: memref<8x128xf32, #tpu.memory_space<vmem>>) attributes {dimension_semantics = [#tpu.dimension_semantics<parallel>, #tpu.dimension_semantics<parallel>, #tpu.dimension_semantics<parallel>, #tpu.dimension_semantics<arbitrary>], iteration_bounds = array<i64: 2, 1, 2, 1>, scalar_prefetch = 0 : i64, scratch_operands = 1 : i64, tpu.core_type = #tpu.core_type<tc>, window_params = [{transform_indices = @transform_0, window_bounds = array<i64: 1, 8, 128>}, {transform_indices = @transform_1, window_bounds = array<i64: 1, 128, 128>}, {transform_indices = @transform_2, window_bounds = array<i64: 1, 8, 128>}, {transform_indices = @transform_3, window_bounds = array<i64: 1, 1, 8, 8>}]} {
    %c0_i32 = arith.constant 0 : i32
    %0 = arith.cmpi eq, %arg3, %c0_i32 : i32
    %1 = arith.extui %0 : i1 to i32
    %c0_i32_0 = arith.constant 0 : i32
    %2 = arith.cmpi ne, %1, %c0_i32_0 : i32
    scf.if %2 {
      %c0_9 = arith.constant 0 : index
      %c0_10 = arith.constant 0 : index
      %c0_11 = arith.constant 0 : index
      %10 = vector.load %arg4[%c0_9, %c0_10, %c0_11] : memref<1x8x128xf32, #tpu.memory_space<vmem>>, vector<1x8x128xf32>
      %11 = vector.shape_cast %10 : vector<1x8x128xf32> to vector<8x128xf32>
      %c0_12 = arith.constant 0 : index
      %c0_13 = arith.constant 0 : index
      %c0_14 = arith.constant 0 : index
      %12 = vector.load %arg5[%c0_12, %c0_13, %c0_14] : memref<1x128x128xf32, #tpu.memory_space<vmem>>, vector<1x128x128xf32>
      %13 = vector.shape_cast %12 : vector<1x128x128xf32> to vector<128x128xf32>
      %cst_15 = arith.constant dense<0.000000e+00> : vector<8x128xf32>
      %14 = tpu.matmul %11, %13, %cst_15 {dimension_numbers = #tpu.dot_dimension_numbers<[1], [0], [0], [1], [0, 0, 1, 1], [], []>} : vector<8x128xf32>, vector<128x128xf32>, vector<8x128xf32> -> vector<8x128xf32>
      %c0_16 = arith.constant 0 : index
      %c0_17 = arith.constant 0 : index
      %15 = vector.load %arg8[%c0_16, %c0_17] : memref<8x128xf32, #tpu.memory_space<vmem>>, vector<8x128xf32>
      tpu.vector_store %arg8[%c0_16, %c0_17], %14 {strides = array<i32>} : memref<8x128xf32, #tpu.memory_space<vmem>>, vector<8x128xf32>,
    } else {
    }
    %c0 = arith.constant 0 : index
    %c0_1 = arith.constant 0 : index
    %3 = vector.load %arg8[%c0, %c0_1] : memref<8x128xf32, #tpu.memory_space<vmem>>, vector<8x128xf32>
    %c0_2 = arith.constant 0 : index
    %c0_3 = arith.constant 0 : index
    %c0_4 = arith.constant 0 : index
    %4 = vector.load %arg6[%c0_2, %c0_3, %c0_4] : memref<1x8x128xf32, #tpu.memory_space<vmem>>, vector<1x8x128xf32>
    %5 = vector.shape_cast %4 : vector<1x8x128xf32> to vector<8x128xf32>
    %cst = arith.constant dense<0.000000e+00> : vector<8x8xf32>
    %6 = tpu.matmul %3, %5, %cst {dimension_numbers = #tpu.dot_dimension_numbers<[1], [1], [0], [0], [0, 0, 1, 0], [], []>} : vector<8x128xf32>, vector<8x128xf32>, vector<8x8xf32> -> vector<8x8xf32>
    %c0_5 = arith.constant 0 : index
    %c0_6 = arith.constant 0 : index
    %c0_7 = arith.constant 0 : index
    %c0_8 = arith.constant 0 : index
    %7 = vector.load %arg7[%c0_5, %c0_6, %c0_7, %c0_8] : memref<1x1x8x8xf32, #tpu.memory_space<vmem>>, vector<1x1x8x8xf32>
    %8 = vector.shape_cast %7 : vector<1x1x8x8xf32> to vector<8x8xf32>
    %9 = vector.shape_cast %6 : vector<8x8xf32> to vector<1x1x8x8xf32>
    tpu.vector_store %arg7[%c0_5, %c0_6, %c0_7, %c0_8], %9 {strides = array<i32>} : memref<1x1x8x8xf32, #tpu.memory_space<vmem>>, vector<1x1x8x8xf32>,
    return
  }
  func.func @transform_0(%arg0: i32, %arg1: i32, %arg2: i32, %arg3: i32) -> (i32, i32, i32) {
    %c0_i32 = arith.constant 0 : i32
    %c0_i32_0 = arith.constant 0 : i32
    return %arg0, %arg1, %c0_i32 : i32, i32, i32
  }
  func.func @transform_1(%arg0: i32, %arg1: i32, %arg2: i32, %arg3: i32) -> (i32, i32, i32) {
    %c0_i32 = arith.constant 0 : i32
    %c0_i32_0 = arith.constant 0 : i32
    %c0_i32_1 = arith.constant 0 : i32
    return %arg2, %c0_i32, %c0_i32_0 : i32, i32, i32
  }
  func.func @transform_2(%arg0: i32, %arg1: i32, %arg2: i32, %arg3: i32) -> (i32, i32, i32) {
    %c0_i32 = arith.constant 0 : i32
    %c0_i32_0 = arith.constant 0 : i32
    return %arg0, %arg3, %c0_i32 : i32, i32, i32
  }
  func.func @transform_3(%arg0: i32, %arg1: i32, %arg2: i32, %arg3: i32) -> (i32, i32, i32, i32) {
    %c0_i32 = arith.constant 0 : i32
    return %arg0, %arg2, %arg1, %arg3 : i32, i32, i32, i32
  }
}

</mosaic_0001>

<bundles_post_ra>
// kernel: tpu_custom_call.1
= control target key start
LH: loop header
LB: loop body
LE: loop exit
PB: predicated region body
PF: predicated region fallthrough
CT: control target
= control target key end

     0   :  { %s1251_s0 = inlined_call_operand.hbm [shape: f32[2,8,128], index: 0, kind: input, shape index: {}]   ;;  %s1252_s1 = inlined_call_operand.hbm [shape: f32[2,128,128], index: 1, kind: input, shape index: {}]   ;;  %s1253_s2 = inlined_call_operand.hbm [shape: f32[2,8,128], index: 2, kind: input, shape index: {}]   ;;  %s1254_s3 = inlined_call_operand.hbm [shape: f32[2,2,8,8], index: 3, kind: output, shape index: {}]  }
   0x1   :  { %1263 = sst [smem:[#allocation25_spill]] %s1252_s1 }
   0x2   :  { %1264 = sst [smem:[#allocation26_spill]] %s1254_s3 }
   0x3   :  { %8 = vsyncpa [#allocation4], 0 }
   0x4   :  { %10 = vsyncpa [#allocation4 + $0x1], 0 }
   0x5   :  { %11 = vsyncpa [#allocation7], 0 }
   0x6   :  { %13 = vsyncpa [#allocation7 + $0x1], 0 }
   0x7   :  { %14 = vsyncpa [#allocation5], 0 }
   0x8   :  { %16 = vsyncpa [#allocation5 + $0x1], 0  ;;  %s954_s12 = smov 0   ;;  %s956_s13 = smov 0  }
   0x9   :  { %s958_s14 = smov 0   ;;  %s960_s15 = smov 0  }
   0xa   :  { %s962_s16 = smov 0   ;;  %s964_s17 = smov 0  }
   0xb   :  { %s966_s18 = smov 0   ;;  %s968_s19 = smov 0  }
   0xc   :  { %s970_s20 = smov 0   ;;  %s972_s21 = smov 0  }
   0xd   :  { %s974_s22 = smov 0   ;;  %s976_s23 = smov 0  }
   0xe   :  { %s978_s24 = smov 0   ;;  %s980_s25 = smov 0  }
   0xf LB: > { %1265 = sst [smem:[#allocation14_spill]] %s886_s14  ;;  %s40_s26 = sadd.s32 1, %s922_s23  ;;  %s930_s25 = sphi %s980_s25, %s22_s25   ;;  %s926_s24 = sphi %s978_s24, %s1297_s24   ;;  %s922_s23 = sphi %s976_s23, %s1296_s23   ;;  %s918_s22 = sphi %s974_s22, %s1295_s22   ;;  %s914_s21 = sphi %s972_s21, %s1305_s21   ;;  %s910_s20 = sphi %s970_s20, %s1293_s20   ;;  %s906_s19 = sphi %s968_s19, %s1304_s19   ;;  %s902_s18 = sphi %s966_s18, %s1303_s18   ;;  %s898_s17 = sphi %s964_s17, %s1291_s17   ;;  %s894_s16 = sphi %s962_s16, %s1302_s16   ;;  %s890_s15 = sphi %s960_s15, %s1301_s15   ;;  %s886_s14 = sphi %s958_s14, %s1289_s14   ;;  %s882_s13 = sphi %s956_s13, %s1300_s13   ;;  %s878_s12 = sphi %s954_s12, %s1299_s12  }
  0x10   : > { %1266 = sst [smem:[#allocation15_spill]] %s898_s17  ;;  %p65_p0 = scmp.eq.s32.totalorder %s930_s25, 0 }
  0x11   : > { %1267 = sst [smem:[#allocation16_spill]] %s910_s20  ;;  %p1026_p1 = scmp.ge.s32.totalorder %s40_s26, 2 }
  0x12   : > { %1268 = sst [smem:[#allocation17_spill]] %s914_s21  ;;  %s83_s28 = sadd.s32 1, %s898_s17 }
  0x13   : > { %1269 = sst [smem:[#allocation18_spill]] %s922_s23  ;;  %p90_p2 = scmp.ne.s32.totalorder %s898_s17, %s894_s16 }
  0x14   : > { %1270 = sst [smem:[#allocation19_spill]] %s926_s24  ;;  %p96_p3 = scmp.ne.s32.totalorder %s894_s16, %s890_s15 }
  0x15   : > { %s1307_s26 = smov (%p1026_p1, %s40_s26), 0  ;;  %p1041_p4 = por %p90_p2, %p65_p0 }
  0x16   : > { %1272 = sst [smem:[#allocation20_spill]] %s1307_s26  ;;  %s1047_s30 = ssub.s32 %s922_s23, %s1307_s26 }
  0x17   : > { %p570_p5 = scmp.lt.s32.totalorder %s930_s25, 4  ;;  %p81_p6 = scmp.eq.s32.totalorder %s1047_s30, 0 }
  0x18   : > { %s200_s4 = sand.u32 1, %s930_s25   ;;  %s202_s5 = sand.u32 1, %s898_s17  }
  0x19   : > { %s1054_s6 = scalar_select %p81_p6, %s898_s17, %s83_s28  }
  0x1a   : > { %s532_s7 = sshll.u32 %s202_s5, 7  ;;  %s547_s8 = sshll.u32 %s922_s23, 7 }
  0x1b   : > { %1274 = sst [smem:[#allocation21_spill]] %s1054_s6  ;;  %s204_s26 = scalar_lea.vmem [#allocation6], %s532_s7 }
  0x1c   : > { %s1275_s1 = sld [smem:[#allocation25_spill]]  ;;  %s212_s21 = sshll.u32 %s204_s26, 4  ;;  %s213_s21 = int_to_ptr.vmem [resolvable:$true] %s212_s21 }
  0x1d   : > { %p560_p7 = pnand %p570_p5, %p1041_p4  ;;  %p537_p8 = scmp.ge.s32.totalorder %s930_s25, 1 }
  0x1e   : > { %p240_p9 = scmp.lt.s32.totalorder %s930_s25, 5  ;;  %s1066_s28 = scalar_lea.sflag [#allocation7], %s200_s4 }
  0x1f   : > { %s932_s5 = smov 128   ;;  %s933_s7 = smov 8  }
  0x20   : > { %p1069_p10 = pnand %p537_p8, %p240_p9  ;;  %s1074_s29 = sadd.s32 4294967295, %s930_s25  }
  0x21   : > { %s48_s9 = sadd.s32 1, %s926_s24  ;;  %s57_s4 = sadd.s32 1, %s910_s20 }
  0x22   : > { %s209_s11 = scalar_lea.hbm %s1275_s1, %s547_s8  ;;  %s527_s8 = sadd.s32 4294967294, %s930_s25  }
  0x23   : > { %s210_s3 = sshll.u32 %s209_s11, 4  ;;  %s1309_s9 = smov (!%p1026_p1, %s48_s9), %s926_s24  ;;  %s211_s3 = int_to_ptr.hbm [resolvable:$true] %s210_s3 }
  0x24   : > { %562 = dma.hbm_to_vmem [thread:$0]  (!%p560_p7), %s211_s3, 2048, %s213_s21, %s1066_s28, %s932_s5, %s932_s5, %s933_s7  }
  0x25   : > { %p64_p11 = scmp.ne.s32.totalorder %s910_s20, %s906_s19  ;;  %p50_p12 = scmp.ge.s32.totalorder %s1309_s9, 2 }
  0x26   : > { %p70_p13 = scmp.ne.s32.totalorder %s906_s19, %s902_s18  ;;  %p71_p4 = scmp.eq.s32.totalorder %s1074_s29, 0 }
  0x27   : > { %p1088_p2 = por %p65_p0, %p64_p11  ;;  %s1311_s9 = smov (%p50_p12, %s1309_s9), 0 }
  0x28   : > { %1278 = sst [smem:[#allocation22_spill]] %s1311_s9  ;;  %p1095_p1 = por %p71_p4, %p70_p13 }
  0x29   : > { %p1102_p6 = por %p96_p3, %p71_p4  ;;  %s52_s18 = ssub.s32 %s926_s24, %s1311_s9 }
  0x2a   : > { %s143_s10 = sadd.s32 1, %s886_s14  ;;  %p55_p0 = scmp.eq.s32.totalorder %s52_s18, 0 }
  0x2b   : > { %s136_s11 = sor.u32 %s1047_s30, %s52_s18  ;;  %p153_p8 = scmp.ne.s32.totalorder %s886_s14, %s882_s13 }
  0x2c   : > { %p141_p7 = scmp.eq.s32.totalorder %s136_s11, 0  ;;  %p154_p9 = scmp.eq.s32.totalorder %s1074_s29, 3 }
  0x2d   : > { %s1113_s5 = scalar_select %p55_p0, %s910_s20, %s57_s4  }
  0x2e   : > { %s1116_s7 = scalar_select %p141_p7, %s886_s14, %s143_s10  }
  0x2f   : > { %1281 = sst [smem:[#allocation23_spill]] %s1113_s5  ;;  %p159_p11 = scmp.ne.s32.totalorder %s882_s13, %s878_s12 }
  0x30   : > { %1282 = sst [smem:[#allocation24_spill]] %s1116_s7  ;;  %p160_p12 = scmp.eq.s32.totalorder %s527_s8, 3 }
  0x31   : > { %s180_s15 = sand.u32 1, %s910_s20   ;;  %p1122_p3 = por %p154_p9, %p153_p8 }
  0x32   : > { %p1126_p13 = por %p160_p12, %p159_p11  ;;  %s530_s30 = sshll.u32 %s180_s15, 3 }
  0x33   : > { %s531_s18 = sshll.u32 %s926_s24, 3  ;;  %s184_s23 = scalar_lea.vmem [#allocation3], %s530_s30 }
  0x34   : > { %s189_s10 = scalar_lea.hbm %s1251_s0, %s531_s18  ;;  %s193_s5 = sshll.u32 %s184_s23, 4  ;;  %s194_s5 = int_to_ptr.vmem [resolvable:$true] %s193_s5 }
  0x35   : > { %s191_s6 = sshll.u32 %s189_s10, 4  ;;  %p557_p4 = pnand %p570_p5, %p1088_p2  ;;  %s192_s6 = int_to_ptr.hbm [resolvable:$true] %s191_s6 }
  0x36   : > { %s231_s17 = scalar_lea.hbm %s1253_s2, %s531_s18  ;;  %s181_s14 = scalar_lea.sflag [#allocation4], %s180_s15 }
  0x37   : > { %s233_s7 = sshll.u32 %s231_s17, 4  ;;  %s226_s24 = scalar_lea.vmem [#allocation8], %s530_s30  ;;  %s234_s7 = int_to_ptr.hbm [resolvable:$true] %s233_s7 }
  0x38   : > { %559 = dma.hbm_to_vmem [thread:$0]  (!%p557_p4), %s192_s6, 128, %s194_s5, %s181_s14  }
  0x39   : > { %s235_s4 = sshll.u32 %s226_s24, 4  ;;  %244 = sbr.rel (%p1069_p10) target bundleno = 356 (0x164), region = 32  ;;  %s236_s4 = int_to_ptr.vmem [resolvable:$true] %s235_s4 }
  0x3a   : > { %565 = dma.hbm_to_vmem [thread:$0]  (!%p557_p4), %s234_s7, 128, %s236_s4, %s1066_s28  }
  0x3b   : > { %s246_s23 = sand.u32 (!%p1069_p10), 1, %s906_s19  }
  0x3c   : > { %s1145_s3 = sshll.u32 (!%p1069_p10), %s246_s23, 3  ;;  %s247_s11 = scalar_lea.sflag (!%p1069_p10), [#allocation4], %s246_s23 }
  0x3d   : > { %s250_s20 = scalar_lea.vmem (!%p1069_p10), [#allocation3], %s1145_s3 }
  0x3e   : > { %861 = dma.done.wait (%p1095_p1), %s247_s11, 128  }
  0x3f   : > { %863 = vsyncadd (%p1095_p1), %s247_s11, 4294967168  ;;  %s256_s14 = sand.u32 1, %s1074_s29   ;;  %s258_s17 = sand.u32 1, %s894_s16  }
  0x40   : > { %s539_s24 = sshll.u32 %s258_s17, 7  ;;  %s257_s6 = scalar_lea.sflag [#allocation7], %s256_s14 }
  0x41   : > { %s1154_s28 = scalar_lea.vmem [#allocation6], %s539_s24 }
  0x42   : > { %865 = dma.done.wait (%p1102_p6), %s257_s6, 2048  }
  0x43   : > { %867 = vsyncadd (%p1102_p6), %s257_s6, 4294965248  ;;  %s270_s26 = scalar_lea.vmem [#allocation8], %s1145_s3 }
  0x44   : > { %869 = dma.done.wait (%p1095_p1), %s257_s6, 128  }
  0x45   : > { %871 = vsyncadd (%p1095_p1), %s257_s6, 4294967168  ;;  %v324_v0 = vld [vmem:[%s1154_s28 + $0x78] sm:$0xff]  ;;  %v323_v1 = vld [vmem:[%s1154_s28 + $0x70] sm:$0xff]  ;;  %s1285_s29 = sld [smem:[#allocation17_spill]]  ;;  %s543_s21 = sshll.u32 %s918_s22, 1  ;;  %vm368_vm0 = vcmask 64512  }
  0x46   : > { %325 = vmatpush.msra.mxu0 %v324_v0  ;;  %v322_v2 = vld [vmem:[%s1154_s28 + $0x68] sm:$0xff]  ;;  %v321_v3 = vld [vmem:[%s1154_s28 + $0x60] sm:$0xff]  ;;  %v320_v5 = vld [vmem:[%s1154_s28 + $0x58] sm:$0xff]  ;;  %s301_s27 = sand.u32 1, %s882_s13   ;;  %s1286_s10 = sld [smem:[#allocation26_spill]] }
  0x47   : > { %v347_v4 = vld [vmem:[%s270_s26] sm:$0xff]  ;;  %v319_v6 = vld [vmem:[%s1154_s28 + $0x50] sm:$0xff]  ;;  %v316_v9 = vld [vmem:[%s1154_s28 + $0x38] sm:$0xff]  ;;  %s541_s7 = sshll.u32 %s301_s27, 3  ;;  %s371_s3 = scalar_lea.sflag [#allocation5], %s301_s27 }
  0x48   : > { %326 = vmatpush.msra.mxu0 %v323_v1  ;;  %363 = vmatpush.xpose.msra.mxu1 %v347_v4  ;;  %v318_v7 = vld [vmem:[%s1154_s28 + $0x48] sm:$0xff]  ;;  %v317_v8 = vld [vmem:[%s1154_s28 + $0x40] sm:$0xff]  ;;  %v315_v10 = vld [vmem:[%s1154_s28 + $0x30] sm:$0xff]  ;;  %s303_s4 = scalar_lea.vmem [#allocation9], %s541_s7 }
  0x49   : > { %v314_v11 = vld [vmem:[%s1154_s28 + $0x28] sm:$0xff]  ;;  %v313_v12 = vld [vmem:[%s1154_s28 + $0x20] sm:$0xff]  ;;  %v312_v13 = vld [vmem:[%s1154_s28 + $0x18] sm:$0xff]  ;;  %s387_s23 = sshll.u32 %s303_s4, 4  ;;  %s388_s23 = int_to_ptr.vmem [resolvable:$true] %s387_s23 }
  0x4a   : > { %327 = vmatpush.msra.mxu0 %v322_v2  ;;  %v311_v14 = vld [vmem:[%s1154_s28 + $0x10] sm:$0xff]  ;;  %v310_v15 = vld [vmem:[%s1154_s28 + $0x8] sm:$0xff]  ;;  %v309_v16 = vld [vmem:[%s1154_s28] sm:$0xff] }
  0x4b   : > { %v308_v17 = vld [vmem:[%s250_s20] sm:$0xff]  ;;  %s383_s5 = sadd.s32 %s1285_s29, %s543_s21 }
  0x4c   : > { %328 = vmatpush.msra.mxu0 %v321_v3  ;;  %s544_s15 = sshll.u32 %s383_s5, 3  ;;  %s796_s24 = scalar_lea.hbm %s1286_s10, 32 }
  0x4d   : > { %s385_s8 = scalar_lea.hbm %s1286_s10, %s544_s15 }
  0x4e   : > { %329 = vmatpush.msra.mxu0 %v320_v5  ;;  %s389_s11 = sshll.u32 %s385_s8, 4  ;;  %s390_s11 = int_to_ptr.hbm [resolvable:$true] %s389_s11 }
  0x4f   : > { %s790_s20 = sshra.s32 %s390_s11, 4  ;;  %s791_s20 = int_to_ptr.hbm [resolvable:$true] %s790_s20 }
  0x50   : > { %330 = vmatpush.msra.mxu0 %v319_v6  ;;  %s792_s22 = scalar_lea.hbm %s791_s20, 8  ;;  %p797_p1 = scmp.lt.s32.totalorder %s791_s20, %s1286_s10 }
  0x51   : > { %p793_p5 = scmp.ne.s32.totalorder %s791_s20, %s792_s22  ;;  %p798_p6 = scmp.lt.s32.totalorder %s796_s24, %s792_s22 }
  0x52   : > { %331 = vmatpush.msra.mxu0 %v318_v7 }
  0x53   : > { %p794_p10 = pnand %p793_p5, %p1122_p3  ;;  %p799_p0 = por %p798_p6, %p797_p1 }
  0x54   : > { %332 = vmatpush.msra.mxu0 %v317_v8 }
  0x55   : > { %p795_p2 = pneg %p794_p10 }
  0x56   : > { %333 = vmatpush.msra.mxu0 %v316_v9 }
  0x57   : > { %p800_p7 = pnand %p799_p0, %p795_p2 }
  0x58   : > { %334 = vmatpush.msra.mxu0 %v315_v10 }
  0x5a   : > { %335 = vmatpush.msra.mxu0 %v314_v11 }
  0x5c   : > { %336 = vmatpush.msra.mxu0 %v313_v12 }
  0x5e   : > { %337 = vmatpush.msra.mxu0 %v312_v13 }
  0x60   : > { %338 = vmatpush.msra.mxu0 %v311_v14 }
  0x62   : > { %339 = vmatpush.msra.mxu0 %v310_v15 }
  0x64   : > { %340 = vmatpush.msra.mxu0 %v309_v16 }
  0x65   : > { %341 = vmatmul.f32.vlgmr.msra.gmra.mxu0 %v308_v17 }
  0xe2   : > { %v342_v18 = vpop.f32.mrf.mxu0 }
  0xe3   : > { %364 = vmatmul.f32.vlgmr.msra.gmra.mxu1 %v342_v18 }
 0x160   : > { %v365_v19 = vpop.f32.mrf.mxu1 }
 0x161   : > { %369 = vst.msk [vmem:[%s303_s4] sm:$0xff] %vm368_vm0, %v365_v19 }
 0x162   : > { %803 = shalt.err (!%p800_p7)
}
 0x163   : > { %554 = dma.vmem_to_hbm [thread:$0]  (%p1122_p3), %s388_s23, 128, %s390_s11, %s371_s3  }
 0x164 PF: > { %p571_p8 = scmp.ge.s32.totalorder %s930_s25, 2  ;;  %s401_s26 = sand.u32 1, %s878_s12  }
 0x165   : > { %s402_s29 = scalar_lea.sflag [#allocation5], %s401_s26 }
 0x166   : > { %p567_p9 = pnand %p571_p8, %p1126_p13 }
 0x168   : > { %p568_p11 = pneg %p567_p9 }
 0x16a   : > { %873 = dma.done.wait (%p568_p11), %s402_s29, 128  }
 0x16b   : > { %875 = vsyncadd (%p568_p11), %s402_s29, 4294967168  ;;  %s22_s25 = sadd.s32 1, %s930_s25   ;;  %s1288_s1 = sld [smem:[#allocation14_spill]] }
 0x16c   : > { %p1204_p12 = scmp.ge.s32.totalorder %s22_s25, 6   ;;  %s1289_s14 = sld [smem:[#allocation24_spill]] }
 0x16d   : > { %s1290_s27 = sld [smem:[#allocation15_spill]]  ;;  %s1299_s12 = smov %s882_s13 }
 0x16e   : > { %s1291_s17 = sld [smem:[#allocation21_spill]]  ;;  %s1301_s15 = smov %s894_s16 }
 0x16f   : > { %s1292_s5 = sld [smem:[#allocation16_spill]]  ;;  %s1303_s18 = smov %s906_s19 }
 0x170   : > { %s1293_s20 = sld [smem:[#allocation23_spill]] }
 0x171   : > { %s1294_s9 = sld [smem:[#allocation18_spill]]  ;;  %s1300_s13 = smov %s1288_s1 }
 0x172   : > { %s1295_s22 = sld [smem:[#allocation19_spill]] }
 0x173   : > { %s1296_s23 = sld [smem:[#allocation20_spill]]  ;;  %s1302_s16 = smov %s1290_s27 }
 0x174   : > { %s1297_s24 = sld [smem:[#allocation22_spill]]  ;;  %21 = sbr.rel (!%p1204_p12) target bundleno = 15 (0xf), region = 105 }
 0x175   : > { %s1304_s19 = smov %s1292_s5 }
 0x177   : > { %s1305_s21 = smov %s1294_s9 }
 0x179   :  { %408 = vsyncpa [#allocation4], 1 }
 0x17a   :  { %410 = vsyncpa [#allocation4 + $0x1], 1 }
 0x17b   :  { %411 = vsyncpa [#allocation7], 1 }
 0x17c   :  { %413 = vsyncpa [#allocation7 + $0x1], 1 }
 0x17d   :  { %414 = vsyncpa [#allocation5], 1 }
 0x17e   :  { %416 = vsyncpa [#allocation5 + $0x1], 1 }

</bundles_post_ra>
